<compile_context>
chip_gen: v7x
topology: tpu7x:2x2x1
jax: 0.10.0
libtpu: 0.0.40
codegen_flags: <defaults>
</compile_context>

<pallas_src>
import functools

import jax
import jax.numpy as jnp
from jax.experimental import pallas as pl
from jax.experimental.pallas import tpu as pltpu

H1 = 128
H2 = 64
OUT = 5
OUT_PAD = 128          # lane-dense padded output width (multiple of 128)


def _round_up(x, m):
    return ((x + m - 1) // m) * m


def mlp_kernel(x_ref, w1_ref, b1_ref, w2_ref, b2_ref, w3_ref, b3_ref, o_ref):
    # fc1: bf16 MXU matmul, f32 accumulate, f32 bias + ReLU on the VPU.
    h1 = jnp.dot(x_ref[...], w1_ref[...], preferred_element_type=jnp.float32)
    h1 = jnp.maximum(h1 + b1_ref[...], 0.0)                     # (B_T, 128) f32

    # fc2 (negligible compute; stays fused, bf16 into the MXU).
    h2 = jnp.dot(h1.astype(jnp.bfloat16), w2_ref[...],
                 preferred_element_type=jnp.float32)
    h2 = jnp.maximum(h2 + b2_ref[...], 0.0)                     # (B_T, 64) f32

    # output layer, padded to 128 lanes so the store is full-width.
    out = jnp.dot(h2.astype(jnp.bfloat16), w3_ref[...],
                  preferred_element_type=jnp.float32)
    o_ref[...] = (out + b3_ref[...]).astype(o_ref.dtype)        # (B_T, 128)


def multi_output_regressor(x, params, *, block_b=1024):
    """x: (B, D) float32. params: dict of w1,b1,w2,b2,w3,b3 (x @ W layout)."""
    B, D = x.shape

    # Cast MXU operands to bf16 (biases stay f32 for the epilogue).
    w1 = params["w1"].astype(jnp.bfloat16)                      # (D, 128)
    w2 = params["w2"].astype(jnp.bfloat16)                      # (128, 64)
    b1, b2 = params["b1"], params["b2"]                         # f32
    # Lane-dense output layer: zero-pad 5 -> 128 columns.
    w3p = jnp.zeros((H2, OUT_PAD), jnp.bfloat16).at[:, :OUT].set(
        params["w3"].astype(jnp.bfloat16))
    b3p = jnp.zeros((1, OUT_PAD), jnp.float32).at[:, :OUT].set(params["b3"])

    x = x.astype(jnp.bfloat16)

    # Batch tiling: round up to the bf16 sublane multiple (16) and the tile.
    b_tile = min(block_b, _round_up(B, 16))
    b_padded = _round_up(B, b_tile)
    if b_padded != B:
        x = jnp.pad(x, ((0, b_padded - B), (0, 0)))

    grid = (b_padded // b_tile,)
    const = lambda shape: pl.BlockSpec(shape, lambda i: (0, 0))

    out = pl.pallas_call(
        mlp_kernel,
        out_shape=jax.ShapeDtypeStruct((b_padded, OUT_PAD), jnp.float32),
        grid=grid,
        in_specs=[
            pl.BlockSpec((b_tile, D), lambda i: (i, 0)),   # x: streamed row tiles
            const((D, H1)), const((1, H1)),                # weights: VMEM-resident
            const((H1, H2)), const((1, H2)),
            const((H2, OUT_PAD)), const((1, OUT_PAD)),
        ],
        out_specs=pl.BlockSpec((b_tile, OUT_PAD), lambda i: (i, 0)),
        compiler_params=pltpu.CompilerParams(
            dimension_semantics=("parallel",),             # megacore on v7x
            vmem_limit_bytes=32 * 1024 * 1024,
        ),
    )(x, w1, b1, w2, b2, w3p, b3p)

    return out[:B, :OUT]


def init_params(key, input_dim):
    """Deterministic init mirroring nn.Linear's uniform(-1/sqrt(fan_in), +...)."""
    ks = jax.random.split(key, 6)

    def linear(kw, kb, fan_in, fan_out):
        bound = 1.0 / jnp.sqrt(fan_in)
        w = jax.random.uniform(kw, (fan_in, fan_out), jnp.float32, -bound, bound)
        b = jax.random.uniform(kb, (1, fan_out), jnp.float32, -bound, bound)
        return w, b

    w1, b1 = linear(ks[0], ks[1], input_dim, H1)
    w2, b2 = linear(ks[2], ks[3], H1, H2)
    w3, b3 = linear(ks[4], ks[5], H2, OUT)
    return {"w1": w1, "b1": b1, "w2": w2, "b2": b2, "w3": w3, "b3": b3}


def reference(x, p):
    """Pure-jnp reference mirroring the kernel's bf16-MXU / f32-accumulate math."""
    h1 = jnp.dot(x.astype(jnp.bfloat16), p["w1"].astype(jnp.bfloat16),
                 preferred_element_type=jnp.float32)
    h1 = jnp.maximum(h1 + p["b1"], 0.0)
    h2 = jnp.dot(h1.astype(jnp.bfloat16), p["w2"].astype(jnp.bfloat16),
                 preferred_element_type=jnp.float32)
    h2 = jnp.maximum(h2 + p["b2"], 0.0)
    out = jnp.dot(h2.astype(jnp.bfloat16), p["w3"].astype(jnp.bfloat16),
                  preferred_element_type=jnp.float32)
    return out + p["b3"]


if __name__ == "__main__":
    key = jax.random.PRNGKey(0)
    k_x, k_p, k_x2 = jax.random.split(key, 3)

    # Small demo shapes: batch=8, input_dim=32 (pads to one 16-row tile).
    B, D = 8, 32
    x = jax.random.normal(k_x, (B, D), jnp.float32)
    params = init_params(k_p, D)

    out = multi_output_regressor(x, params)
    out = jax.block_until_ready(out)
    ref = reference(x, params)
    assert out.shape == (B, OUT)
    assert jnp.allclose(out, ref, atol=1e-3, rtol=1e-3), "mismatch vs reference"

    # Second check: ragged batch spanning multiple grid steps (tail padding).
    B2 = 300
    x2 = jax.random.normal(k_x2, (B2, D), jnp.float32)
    out2 = jax.block_until_ready(
        multi_output_regressor(x2, params, block_b=128))
    ref2 = reference(x2, params)
    assert out2.shape == (B2, OUT)
    assert jnp.allclose(out2, ref2, atol=1e-3, rtol=1e-3), "mismatch (tiled) vs reference"

    print("KERNEL_OK")
</pallas_src>

<mosaic_0001>
module attributes {stable_mosaic.version = 11 : i64} {
  func.func @mlp_kernel(%arg0: i32, %arg1: memref<16x32xbf16, #tpu.memory_space<vmem>>, %arg2: memref<32x128xbf16, #tpu.memory_space<vmem>>, %arg3: memref<1x128xf32, #tpu.memory_space<vmem>>, %arg4: memref<128x64xbf16, #tpu.memory_space<vmem>>, %arg5: memref<1x64xf32, #tpu.memory_space<vmem>>, %arg6: memref<64x128xbf16, #tpu.memory_space<vmem>>, %arg7: memref<1x128xf32, #tpu.memory_space<vmem>>, %arg8: memref<16x128xf32, #tpu.memory_space<vmem>>) attributes {dimension_semantics = [#tpu.dimension_semantics<parallel>], iteration_bounds = array<i64: 1>, scalar_prefetch = 0 : i64, scratch_operands = 0 : i64, tpu.core_type = #tpu.core_type<tc>, window_params = [{transform_indices = @transform_0, window_bounds = array<i64: 16, 32>}, {pipeline_mode = #tpu.pipeline_mode<synchronous>, transform_indices = @transform_1, window_bounds = array<i64: 32, 128>}, {pipeline_mode = #tpu.pipeline_mode<synchronous>, transform_indices = @transform_2, window_bounds = array<i64: 1, 128>}, {pipeline_mode = #tpu.pipeline_mode<synchronous>, transform_indices = @transform_3, window_bounds = array<i64: 128, 64>}, {pipeline_mode = #tpu.pipeline_mode<synchronous>, transform_indices = @transform_4, window_bounds = array<i64: 1, 64>}, {pipeline_mode = #tpu.pipeline_mode<synchronous>, transform_indices = @transform_5, window_bounds = array<i64: 64, 128>}, {pipeline_mode = #tpu.pipeline_mode<synchronous>, transform_indices = @transform_6, window_bounds = array<i64: 1, 128>}, {transform_indices = @transform_7, window_bounds = array<i64: 16, 128>}]} {
    %c0 = arith.constant 0 : index
    %c0_0 = arith.constant 0 : index
    %0 = vector.load %arg1[%c0, %c0_0] : memref<16x32xbf16, #tpu.memory_space<vmem>>, vector<16x32xbf16>
    %c0_1 = arith.constant 0 : index
    %c0_2 = arith.constant 0 : index
    %1 = vector.load %arg2[%c0_1, %c0_2] : memref<32x128xbf16, #tpu.memory_space<vmem>>, vector<32x128xbf16>
    %cst = arith.constant dense<0.000000e+00> : vector<16x128xf32>
    %2 = tpu.matmul %0, %1, %cst {dimension_numbers = #tpu.dot_dimension_numbers<[1], [0], [0], [1], [0, 0, 1, 1], [], []>} : vector<16x32xbf16>, vector<32x128xbf16>, vector<16x128xf32> -> vector<16x128xf32>
    %c0_3 = arith.constant 0 : index
    %c0_4 = arith.constant 0 : index
    %3 = vector.load %arg3[%c0_3, %c0_4] : memref<1x128xf32, #tpu.memory_space<vmem>>, vector<1x128xf32>
    %4 = vector.broadcast %3 : vector<1x128xf32> to vector<16x128xf32>
    %5 = arith.addf %2, %4 : vector<16x128xf32>
    %cst_5 = arith.constant 0.000000e+00 : f32
    %6 = vector.broadcast %cst_5 : f32 to vector<16x128xf32>
    %7 = arith.maximumf %5, %6 : vector<16x128xf32>
    %8 = arith.truncf %7 : vector<16x128xf32> to vector<16x128xbf16>
    %c0_6 = arith.constant 0 : index
    %c0_7 = arith.constant 0 : index
    %9 = vector.load %arg4[%c0_6, %c0_7] : memref<128x64xbf16, #tpu.memory_space<vmem>>, vector<128x64xbf16>
    %cst_8 = arith.constant dense<0.000000e+00> : vector<16x64xf32>
    %10 = tpu.matmul %8, %9, %cst_8 {dimension_numbers = #tpu.dot_dimension_numbers<[1], [0], [0], [1], [0, 0, 1, 1], [], []>} : vector<16x128xbf16>, vector<128x64xbf16>, vector<16x64xf32> -> vector<16x64xf32>
    %c0_9 = arith.constant 0 : index
    %c0_10 = arith.constant 0 : index
    %11 = vector.load %arg5[%c0_9, %c0_10] : memref<1x64xf32, #tpu.memory_space<vmem>>, vector<1x64xf32>
    %12 = vector.broadcast %11 : vector<1x64xf32> to vector<16x64xf32>
    %13 = arith.addf %10, %12 : vector<16x64xf32>
    %cst_11 = arith.constant 0.000000e+00 : f32
    %14 = vector.broadcast %cst_11 : f32 to vector<16x64xf32>
    %15 = arith.maximumf %13, %14 : vector<16x64xf32>
    %16 = arith.truncf %15 : vector<16x64xf32> to vector<16x64xbf16>
    %c0_12 = arith.constant 0 : index
    %c0_13 = arith.constant 0 : index
    %17 = vector.load %arg6[%c0_12, %c0_13] : memref<64x128xbf16, #tpu.memory_space<vmem>>, vector<64x128xbf16>
    %cst_14 = arith.constant dense<0.000000e+00> : vector<16x128xf32>
    %18 = tpu.matmul %16, %17, %cst_14 {dimension_numbers = #tpu.dot_dimension_numbers<[1], [0], [0], [1], [0, 0, 1, 1], [], []>} : vector<16x64xbf16>, vector<64x128xbf16>, vector<16x128xf32> -> vector<16x128xf32>
    %c0_15 = arith.constant 0 : index
    %c0_16 = arith.constant 0 : index
    %19 = vector.load %arg7[%c0_15, %c0_16] : memref<1x128xf32, #tpu.memory_space<vmem>>, vector<1x128xf32>
    %20 = vector.broadcast %19 : vector<1x128xf32> to vector<16x128xf32>
    %21 = arith.addf %18, %20 : vector<16x128xf32>
    %c0_17 = arith.constant 0 : index
    %c0_18 = arith.constant 0 : index
    %22 = vector.load %arg8[%c0_17, %c0_18] : memref<16x128xf32, #tpu.memory_space<vmem>>, vector<16x128xf32>
    tpu.vector_store %arg8[%c0_17, %c0_18], %21 {strides = array<i32>} : memref<16x128xf32, #tpu.memory_space<vmem>>, vector<16x128xf32>,
    return
  }
  func.func @transform_0(%arg0: i32) -> (i32, i32) {
    %c0_i32 = arith.constant 0 : i32
    %c0_i32_0 = arith.constant 0 : i32
    return %arg0, %c0_i32 : i32, i32
  }
  func.func @transform_1(%arg0: i32) -> (i32, i32) {
    %c0_i32 = arith.constant 0 : i32
    %c0_i32_0 = arith.constant 0 : i32
    %c0_i32_1 = arith.constant 0 : i32
    return %c0_i32, %c0_i32_0 : i32, i32
  }
  func.func @transform_2(%arg0: i32) -> (i32, i32) {
    %c0_i32 = arith.constant 0 : i32
    %c0_i32_0 = arith.constant 0 : i32
    %c0_i32_1 = arith.constant 0 : i32
    return %c0_i32, %c0_i32_0 : i32, i32
  }
  func.func @transform_3(%arg0: i32) -> (i32, i32) {
    %c0_i32 = arith.constant 0 : i32
    %c0_i32_0 = arith.constant 0 : i32
    %c0_i32_1 = arith.constant 0 : i32
    return %c0_i32, %c0_i32_0 : i32, i32
  }
  func.func @transform_4(%arg0: i32) -> (i32, i32) {
    %c0_i32 = arith.constant 0 : i32
    %c0_i32_0 = arith.constant 0 : i32
    %c0_i32_1 = arith.constant 0 : i32
    return %c0_i32, %c0_i32_0 : i32, i32
  }
  func.func @transform_5(%arg0: i32) -> (i32, i32) {
    %c0_i32 = arith.constant 0 : i32
    %c0_i32_0 = arith.constant 0 : i32
    %c0_i32_1 = arith.constant 0 : i32
    return %c0_i32, %c0_i32_0 : i32, i32
  }
  func.func @transform_6(%arg0: i32) -> (i32, i32) {
    %c0_i32 = arith.constant 0 : i32
    %c0_i32_0 = arith.constant 0 : i32
    %c0_i32_1 = arith.constant 0 : i32
    return %c0_i32, %c0_i32_0 : i32, i32
  }
  func.func @transform_7(%arg0: i32) -> (i32, i32) {
    %c0_i32 = arith.constant 0 : i32
    %c0_i32_0 = arith.constant 0 : i32
    return %arg0, %c0_i32 : i32, i32
  }
}

</mosaic_0001>

<bundles_post_ra>
// kernel: tpu_custom_call.1
= control target key start
LH: loop header
LB: loop body
LE: loop exit
PB: predicated region body
PF: predicated region fallthrough
CT: control target
= control target key end

     0   :  { %v444_v1 = vmov 0.0   ;;  %vm445_vm0 = vmmov 0   ;;  %vm58_vm1 = vcmask 261120   ;;  %s558_s0 = inlined_call_operand.vmem [shape: bf16[16,32], index: 0, kind: input, shape index: {}]   ;;  %s559_s1 = inlined_call_operand.vmem [shape: bf16[32,128], index: 1, kind: input, shape index: {}]   ;;  %s560_s2 = inlined_call_operand.vmem [shape: f32[1,128], index: 2, kind: input, shape index: {}]   ;;  %s561_s3 = inlined_call_operand.vmem [shape: bf16[128,64], index: 3, kind: input, shape index: {}]   ;;  %s562_s4 = inlined_call_operand.vmem [shape: f32[1,64], index: 4, kind: input, shape index: {}]   ;;  %s563_s5 = inlined_call_operand.vmem [shape: bf16[64,128], index: 5, kind: input, shape index: {}]   ;;  %s564_s6 = inlined_call_operand.vmem [shape: f32[1,128], index: 6, kind: input, shape index: {}]   ;;  %s565_s7 = inlined_call_operand.hbm [shape: f32[16,128], index: 7, kind: output, shape index: {}]  }
   0x1   :  { %v405_v0 = vld [vmem:[%s559_s1] sm:$0xff]   ;;  %360 = vmatprep.subr.bf16.mxu0 %v444_v1  ;;  %368 = vmatprep.subr.bf16.mxu1 %v444_v1  ;;  %v406_v2 = vld [vmem:[%s559_s1 + $0x8] sm:$0xff]   ;;  %v410_v6 = vld [vmem:[%s561_s3 + $0x10] sm:$0xff]  }
   0x2   :  { %361 = vmatpush3.bf16.msra.mxu0 %v405_v0  ;;  %364 = vmatprep.mubr.msk.bf16.mxu0 %vm445_vm0, %v444_v1  ;;  %v408_v3 = vld [vmem:[%s561_s3] sm:$0xff]   ;;  %v409_v5 = vld [vmem:[%s561_s3 + $0x8] sm:$0xff]   ;;  %v411_v7 = vld [vmem:[%s561_s3 + $0x18] sm:$0xff]  }
   0x3   :  { %362 = vmatprep.subr.bf16.mxu0 %v444_v1  ;;  %384 = vmatprep.mubr.msk.bf16.mxu1 %vm445_vm0, %v444_v1  ;;  %v407_v4 = vld [vmem:[%s558_s0] sm:$0xff]  }
   0x4   :  { %369 = vmatpush3.bf16.msra.mxu1 %v408_v3 }
   0x5   :  { %370 = vmatprep.subr.bf16.mxu1 %v444_v1 }
   0x6   :  { %363 = vmatpush3.bf16.msra.mxu0 %v406_v2 }
   0x7   :  { %388 = vmatprep.subr.bf16.mxu0 %v444_v1 }
   0x8   :  { %371 = vmatpush3.bf16.msra.mxu1 %v409_v5 }
   0x9   :  { %365 = vmatmul.mubr.msk.bf16.vlgmr.msra.gmra.mrb[0].mxu0 %vm58_vm1, %v407_v4  ;;  %372 = vmatprep.subr.bf16.mxu1 %v444_v1 }
   0xa   :  { %396 = vmatprep.mubr.msk.bf16.mxu0 %vm445_vm0, %v444_v1 }
   0xc   :  { %373 = vmatpush3.bf16.msra.mxu1 %v410_v6 }
   0xd   :  { %12 = vsyncpa [#allocation3], 0  ;;  %374 = vmatprep.subr.bf16.mxu1 %v444_v1  ;;  %v412_v8 = vld [vmem:[%s561_s3 + $0x20] sm:$0xff]   ;;  %v413_v9 = vld [vmem:[%s561_s3 + $0x28] sm:$0xff]   ;;  %vm260_vm2 = vcmask 523264  }
   0xe   :  { %v414_v10 = vld [vmem:[%s561_s3 + $0x30] sm:$0xff]   ;;  %v415_v11 = vld [vmem:[%s561_s3 + $0x38] sm:$0xff]   ;;  %v416_v12 = vld [vmem:[%s563_s5] sm:$0xff]  }
   0xf   :  { %389 = vmatpush3.bf16.msra.mxu0 %v416_v12  ;;  %v417_v13 = vld [vmem:[%s563_s5 + $0x8] sm:$0xff]   ;;  %v323_v14 = vld [vmem:[%s560_s2] ss:$0 sm:$0xff]  ;;  %v418_v24 = vld [vmem:[%s563_s5 + $0x10] sm:$0xff]  }
  0x10   :  { %375 = vmatpush3.bf16.msra.mxu1 %v411_v7  ;;  %390 = vmatprep.subr.bf16.mxu0 %v444_v1  ;;  %v419_v25 = vld [vmem:[%s563_s5 + $0x18] sm:$0xff]   ;;  %v328_v26 = vld [vmem:[%s562_s4] ss:$0 sm:$0xff]  ;;  %s446_s5 = smov [#allocation2]  }
  0x11   :  { %376 = vmatprep.subr.bf16.mxu1 %v444_v1  ;;  %v337_v36 = vld [vmem:[%s564_s6] ss:$0 sm:$0xff]  ;;  %s312_s10 = sshll.u32 %s446_s5, 4  ;;  %s313_s10 = int_to_ptr.vmem [resolvable:$true] %s312_s10 }
  0x12   :  { %s420_s4 = scalar_lea.vmem %s313_s10, 256  ;;  %p425_p1 = scmp.lt.s32.totalorder %s313_s10, %s313_s10 }
  0x13   :  { %391 = vmatpush3.bf16.msra.mxu0 %v417_v13  ;;  %p421_p0 = scmp.ne.s32.totalorder %s313_s10, %s420_s4  ;;  %p426_p2 = scmp.lt.s32.totalorder %s420_s4, %s420_s4 }
  0x14   :  { %377 = vmatpush3.bf16.msra.mxu1 %v412_v8  ;;  %392 = vmatprep.subr.bf16.mxu0 %v444_v1 }
  0x15   :  { %378 = vmatprep.subr.bf16.mxu1 %v444_v1  ;;  %p427_p3 = por %p426_p2, %p425_p1 }
  0x17   :  { %393 = vmatpush3.bf16.msra.mxu0 %v418_v24  ;;  %p428_p4 = pnand %p427_p3, %p421_p0 }
  0x18   :  { %379 = vmatpush3.bf16.msra.mxu1 %v413_v9  ;;  %394 = vmatprep.subr.bf16.mxu0 %v444_v1 }
  0x19   :  { %380 = vmatprep.subr.bf16.mxu1 %v444_v1 }
  0x1b   :  { %395 = vmatpush3.bf16.msra.mxu0 %v419_v25 }
  0x1c   :  { %381 = vmatpush3.bf16.msra.mxu1 %v414_v10 }
  0x1d   :  { %382 = vmatprep.subr.bf16.mxu1 %v444_v1 }
  0x20   :  { %383 = vmatpush3.bf16.msra.mxu1 %v415_v11 }
  0xdc   :  { %v96_v15 = vpop.f32.mrb[0].mxu0 }
  0xdd   :  { %v97_v16 = vadd.f32 %v323_v14, %v96_v15  ;;  %v366_v17 = vpop.f32.mrb[1].mxu0 }
  0xde   :  { %v99_v18 = vpop.f32.mrb[2].mxu0 }
  0xdf   :  { %v100_v19 = vadd.f32 %v323_v14, %v99_v18  ;;  %v367_v20 = vpop.f32.mrb[3].mxu0  ;;  %v103_v21 = vmax.f32 %v97_v16, 0.0 }
  0xe1   :  { %v104_v22 = vmax.f32 %v100_v19, 0.0 }
  0xe3   :  { %v105_v23 = vpack.c.bf16 %v104_v22, %v103_v21 }
  0xe5   :  { %385 = vmatmul.mubr.bf16.vlgmr.msra.gmra.mrb[0].mxu1 %v105_v23 }
 0x1b8   :  { %v211_v27 = vpop.f32.mrb[0].mxu1 }
 0x1b9   :  { %v212_v28 = vadd.f32 %v328_v26, %v211_v27  ;;  %v386_v29 = vpop.f32.mrb[1].mxu1 }
 0x1ba   :  { %v214_v30 = vpop.f32.mrb[2].mxu1 }
 0x1bb   :  { %v215_v31 = vadd.f32 %v328_v26, %v214_v30  ;;  %v387_v32 = vpop.f32.mrb[3].mxu1  ;;  %v218_v33 = vmax.f32 %v212_v28, 0.0 }
 0x1bd   :  { %v219_v34 = vmax.f32 %v215_v31, 0.0 }
 0x1bf   :  { %v220_v35 = vpack.c.bf16 %v219_v34, %v218_v33 }
 0x1c1   :  { %397 = vmatmul.mubr.msk.bf16.vlgmr.msra.gmra.mrb[4].mxu0 %vm260_vm2, %v220_v35 }
 0x294   :  { %v298_v37 = vpop.f32.mrb[4].mxu0 }
 0x295   :  { %v299_v38 = vadd.f32 %v337_v36, %v298_v37  ;;  %v398_v39 = vpop.f32.mrb[5].mxu0 }
 0x296   :  { %v301_v40 = vpop.f32.mrb[6].mxu0 }
 0x297   :  { %305 = vst [vmem:[#allocation2] sm:$0xff] %v299_v38  ;;  %v302_v41 = vadd.f32 %v337_v36, %v301_v40  ;;  %v399_v42 = vpop.f32.mrb[7].mxu0 }
 0x299   :  { %306 = vst [vmem:[#allocation2 + $0x8] sm:$0xff] %v302_v41 }
 0x29a   :  { %431 = shalt.err (!%p428_p4)
}
 0x29b   :  { %s432_s11 = scalar_lea.hbm %s565_s7, 256 }
 0x29c   :  { %p433_p5 = scmp.ne.s32.totalorder %s565_s7, %s432_s11  ;;  %p436_p6 = scmp.lt.u32.totalorder %s432_s11, %s565_s7 }
 0x29e   :  { %p438_p7 = pnand %p436_p6, %p433_p5 }
 0x2a0   :  { %441 = shalt.err (!%p438_p7)
}
 0x2a1   :  { %s447_s15 = smov 128   ;;  %s448_s16 = smov 8  }
 0x2a2   :  { %318 = dma.vmem_to_hbm [thread:$0]  %s313_s10, 256, %s565_s7, [#allocation3], %s447_s15, %s447_s15, %s448_s16  }
 0x2a3   :  { %442 = dma.done.wait [#allocation3], 256  }
 0x2a4   :  { %443 = vsyncadd [#allocation3], 4294967040 }
 0x2a5   :  { %322 = vsyncpa [#allocation3], 1 }

</bundles_post_ra>
